<compile_context>
chip_gen: v7x
topology: tpu7x:2x2x1
jax: 0.10.0
libtpu: 0.0.40
codegen_flags: <defaults>
</compile_context>

<pallas_src>
import functools

import jax
import jax.numpy as jnp
from jax.experimental import pallas as pl
from jax.experimental.pallas import tpu as pltpu

EPSILON = 1e-6
BN_EPS = 1e-5


def _round_up(n, m):
    return (n + m - 1) // m * m


def _vmem_limit_bytes():
    """Generation-aware scoped-VMEM limit (~75% of physical)."""
    try:
        cap = getattr(pltpu.get_tpu_info(), "vmem_capacity_bytes", 64 * 1024 * 1024)
    except Exception:  # pragma: no cover - conservative fallback
        cap = 64 * 1024 * 1024
    return max(32 * 1024 * 1024, min(int(cap * 3 // 4), 100 * 1024 * 1024))


_VMEM_LIMIT = _vmem_limit_bytes()
_TILE_BUDGET = _VMEM_LIMIT - 4 * 1024 * 1024   # headroom for Mosaic internal scratch


def _pick_lane_tile(M, K, Cout, budget):
    """Largest lane tile whose fused-kernel working set (4 corner streams, double
    buffered, + resident weights + output) fits the VMEM budget."""
    def need(tn):
        return 2 * (4 * K * tn * 4 + Cout * tn * 4) + 2 * K * Cout * 2
    if M <= 1024 and need(M) <= budget:
        return M
    tn = 1024
    while tn > 128 and need(tn) > budget:
        tn //= 2
    return min(tn, M) if M >= 128 else M


# --------------------------------------------------------------------------
# Pallas kernels
# --------------------------------------------------------------------------
def _oft_fused_kernel(tl_ref, br_ref, tr_ref, bl_ref, w_ref, b_ref, o_ref):
    """Fused (tl+br)-(tr+bl) combine + relu(W @ x + b).

    Corner tiles: (1, K, tn) f32 (already scaled by visible/area).
    w: (Cout, K) bf16, b: (Cout, 1) f32, out: (1, Cout, tn) f32.
    The combine stays f32 (integral-image cancellation), only the MXU input is bf16.
    """
    comb = (tl_ref[0] + br_ref[0]) - (tr_ref[0] + bl_ref[0])          # (K, tn) f32
    acc = jnp.dot(w_ref[...], comb.astype(jnp.bfloat16),
                  preferred_element_type=jnp.float32)                 # (Cout, tn)
    o_ref[0] = jnp.maximum(acc + b_ref[...], 0.0).astype(o_ref.dtype)


def oft_fused_linear_relu(tl, br, tr, bl, w, bias):
    """relu(w @ ((tl+br)-(tr+bl)) + bias).  corners: (B, K, M) f32, w: (Cout, K)."""
    B, K, M = tl.shape
    Cout = w.shape[0]
    tn = _pick_lane_tile(M, K, Cout, _TILE_BUDGET)
    n_m = pl.cdiv(M, tn)
    wb = w.astype(jnp.bfloat16)
    b2 = bias.reshape(Cout, 1).astype(jnp.float32)

    corner_spec = pl.BlockSpec((1, K, tn), lambda m, b: (b, 0, m))
    flops = 2 * B * Cout * K * M
    bytes_acc = 4 * B * K * M * 4 + wb.size * 2 + B * Cout * M * 4

    return pl.pallas_call(
        _oft_fused_kernel,
        out_shape=jax.ShapeDtypeStruct((B, Cout, M), jnp.float32),
        grid_spec=pltpu.PrefetchScalarGridSpec(
            num_scalar_prefetch=0,
            grid=(n_m, B),                       # big tiled axis first (v7x 2-TC split)
            in_specs=[corner_spec, corner_spec, corner_spec, corner_spec,
                      pl.BlockSpec((Cout, K), lambda m, b: (0, 0)),
                      pl.BlockSpec((Cout, 1), lambda m, b: (0, 0))],
            out_specs=pl.BlockSpec((1, Cout, tn), lambda m, b: (b, 0, m)),
        ),
        compiler_params=pltpu.CompilerParams(
            dimension_semantics=("parallel", "parallel"),
            vmem_limit_bytes=_VMEM_LIMIT),
        cost_estimate=pl.CostEstimate(flops=flops, transcendentals=0,
                                      bytes_accessed=int(bytes_acc)),
    )(tl, br, tr, bl, wb, b2)


def _conv_tap_kernel(*refs, taps, wo, n_rows):
    """9-tap 3x3 conv on channels-last rows: acc(Wo, Cout) += x(Wo, Cin) @ w(Cin, Cout).
    BN scale pre-folded into weights; epilogue is +shift, relu."""
    rows = refs[:n_rows]
    w_ref, shift_ref, o_ref = refs[n_rows], refs[n_rows + 1], refs[n_rows + 2]
    cout = w_ref.shape[2]
    acc = jnp.zeros((wo, cout), jnp.float32)
    for t, (ri, off) in enumerate(taps):
        lhs = rows[ri][0, 0, off:off + wo, :]                         # (Wo, Cin) bf16
        acc = acc + jnp.dot(lhs, w_ref[t], preferred_element_type=jnp.float32)
    y = acc + shift_ref[...]
    o_ref[0, 0] = jnp.maximum(y, 0.0).astype(o_ref.dtype)


def conv3x3_bn_relu(x, w_taps33, gamma, beta, mean, var, stride, out_dtype=jnp.float32):
    """3x3 conv (pad=1) + eval-mode BN + ReLU, channels-last input x:(B, H, W, Cin).

    w_taps33 is (3, 3, Cin, Cout) already laid out so tap (dy, dx) applies to input
    spatial offset (dy, dx) in THIS layout.  Returns (B, Ho, Wo, Cout), Cout on lanes.
    """
    B, H, W, Cin = x.shape
    Cout = w_taps33.shape[-1]
    Ho = (H - 1) // stride + 1
    Wo = (W - 1) // stride + 1

    scale = (gamma.astype(jnp.float32) / jnp.sqrt(var.astype(jnp.float32) + BN_EPS))
    shift = (beta.astype(jnp.float32) - mean.astype(jnp.float32) * scale).reshape(1, Cout)
    w_taps = (w_taps33.astype(jnp.float32).reshape(9, Cin, Cout)
              * scale[None, None, :]).astype(jnp.bfloat16)

    xc = x.astype(jnp.bfloat16)
    if stride == 1:
        phases = [jnp.pad(xc, ((0, 0), (1, 1), (1, 1), (0, 0)))]
        taps = [(dy, dx) for dy in range(3) for dx in range(3)]
    else:  # stride == 2: even/odd W phases so all in-kernel slices stay contiguous
        eb = Wo - (W // 2)                       # trailing zero column when W is odd
        x_even = jnp.pad(xc[:, :, 1::2, :], ((0, 0), (1, 1), (1, eb), (0, 0)))
        x_odd = jnp.pad(xc[:, :, 0::2, :], ((0, 0), (1, 1), (0, 0), (0, 0)))
        phases = [x_even, x_odd]
        taps = []
        for dy in range(3):
            for dx in range(3):
                phase = 1 if dx == 1 else 0
                off = 1 if dx == 2 else 0
                taps.append((dy * 2 + phase, off))

    row_arrays, row_specs = [], []
    for dy in range(3):
        for arr in phases:
            row_arrays.append(arr)
            row_specs.append(pl.BlockSpec(
                (1, 1, arr.shape[2], Cin),
                lambda h, b, dy=dy: (b, h * stride + dy, 0, 0)))

    in_specs = row_specs + [
        pl.BlockSpec((9, Cin, Cout), lambda h, b: (0, 0, 0)),
        pl.BlockSpec((1, Cout), lambda h, b: (0, 0)),
    ]
    out_spec = pl.BlockSpec((1, 1, Wo, Cout), lambda h, b: (b, h, 0, 0))

    flops = 2 * B * Ho * Wo * Cout * Cin * 9
    bytes_acc = (B * Ho * 3 * phases[0].shape[2] * Cin * 2
                 + w_taps.size * 2
                 + B * Ho * Wo * Cout * jnp.dtype(out_dtype).itemsize)

    return pl.pallas_call(
        functools.partial(_conv_tap_kernel, taps=taps, wo=Wo, n_rows=len(row_arrays)),
        out_shape=jax.ShapeDtypeStruct((B, Ho, Wo, Cout), out_dtype),
        grid_spec=pltpu.PrefetchScalarGridSpec(
            num_scalar_prefetch=0,
            grid=(Ho, B),                        # big axis first (v7x 2-TC split)
            in_specs=in_specs,
            out_specs=out_spec,
        ),
        compiler_params=pltpu.CompilerParams(
            dimension_semantics=("parallel", "parallel"),
            vmem_limit_bytes=_VMEM_LIMIT),
        cost_estimate=pl.CostEstimate(flops=flops, transcendentals=0,
                                      bytes_accessed=int(bytes_acc)),
    )(*row_arrays, w_taps, shift)


def _row_linear_kernel(x_ref, w_ref, b_ref, o_ref, *, act):
    acc = jnp.dot(x_ref[...], w_ref[...], preferred_element_type=jnp.float32)
    y = acc + b_ref[...]
    if act == "sigmoid":
        y = jax.nn.sigmoid(y)
    elif act == "relu":
        y = jnp.maximum(y, 0.0)
    o_ref[...] = y.astype(o_ref.dtype)


def row_linear_act(x, w_t, bias, act="none"):
    """act(x @ w_t + bias).  x:(N, K), w_t:(K, Cout), bias:(Cout,).  Small-N helper."""
    N, K = x.shape
    Cout = w_t.shape[1]
    Np = _round_up(N, 8)
    if Np != N:
        x = jnp.pad(x, ((0, Np - N), (0, 0)))
    tm = min(Np, 256)
    while Np % tm:
        tm //= 2
    out = pl.pallas_call(
        functools.partial(_row_linear_kernel, act=act),
        out_shape=jax.ShapeDtypeStruct((Np, Cout), jnp.float32),
        grid_spec=pltpu.PrefetchScalarGridSpec(
            num_scalar_prefetch=0,
            grid=(Np // tm,),
            in_specs=[
                pl.BlockSpec((tm, K), lambda i: (i, 0)),
                pl.BlockSpec((K, Cout), lambda i: (0, 0)),
                pl.BlockSpec((1, Cout), lambda i: (0, 0)),
            ],
            out_specs=pl.BlockSpec((tm, Cout), lambda i: (i, 0)),
        ),
        compiler_params=pltpu.CompilerParams(
            dimension_semantics=("parallel",),
            vmem_limit_bytes=_VMEM_LIMIT),
    )(x.astype(jnp.float32), w_t.astype(jnp.float32),
      bias.reshape(1, Cout).astype(jnp.float32))
    return out[:N]


# --------------------------------------------------------------------------
# Plain-JAX glue (grid construction, projection, gather-style sampling)
# --------------------------------------------------------------------------
def make_grid(grid_size, grid_offset, grid_res, grid_z_min, grid_z_max):
    depth, width = grid_size
    xoff, yoff, zoff = grid_offset
    xcoords = jnp.arange(0.0, depth + grid_res, grid_res, dtype=jnp.float32) + xoff
    ycoords = jnp.arange(width, 0.0 - grid_res, -grid_res, dtype=jnp.float32) + yoff
    zcoords = jnp.arange(grid_z_max, grid_z_min - grid_res, -grid_res, dtype=jnp.float32)
    zcoords = jnp.pad(zcoords.reshape(-1, 1, 1, 1), ((0, 0), (0, 0), (0, 0), (2, 0)))
    xx, yy = jnp.meshgrid(xcoords, ycoords, indexing="ij")
    xxyy = jnp.stack([xx, yy, jnp.full_like(xx, zoff)], axis=-1)[None]
    xxyyzz = xxyy + zcoords
    return xxyyzz[None]                  # (1, Z, X, Y, 3)


def perspective(matrix, vector):
    vector = vector[..., None]
    homog = jnp.matmul(matrix[..., :-1], vector) + matrix[..., -1:]
    homog = homog[..., 0]
    return homog[..., :-1] / homog[..., -1:]


def grid_sample_zeros(img, grid, out_scale=None):
    """torch.nn.functional.grid_sample (bilinear, padding_mode='zeros',
    align_corners=False).  `out_scale` (shape = grid spatial dims) is folded into the
    bilinear weights, so scaling the output costs no extra HBM pass."""
    B, C, H, W = img.shape
    gx = (grid[..., 0] + 1.0) * (W * 0.5) - 0.5
    gy = (grid[..., 1] + 1.0) * (H * 0.5) - 0.5
    x0 = jnp.floor(gx)
    y0 = jnp.floor(gy)
    x1 = x0 + 1.0
    y1 = y0 + 1.0
    wx1 = gx - x0
    wx0 = 1.0 - wx1
    wy1 = gy - y0
    wy0 = 1.0 - wy1
    if out_scale is not None:
        wx0 = wx0 * out_scale
        wx1 = wx1 * out_scale
    imgf = img.reshape(B, C, H * W)

    def gather(ix, iy):
        valid = ((ix >= 0) & (ix < W) & (iy >= 0) & (iy < H)).astype(img.dtype)
        ixc = jnp.clip(ix, 0, W - 1).astype(jnp.int32)
        iyc = jnp.clip(iy, 0, H - 1).astype(jnp.int32)
        flat = (iyc * W + ixc).reshape(B, -1)
        v = jax.vmap(lambda im, idx: im[:, idx])(imgf, flat)          # (B, C, M)
        v = v.reshape(B, C, *ix.shape[1:])
        return v * valid[:, None]

    out = (gather(x0, y0) * (wx0 * wy0)[:, None]
           + gather(x1, y0) * (wx1 * wy0)[:, None]
           + gather(x0, y1) * (wx0 * wy1)[:, None]
           + gather(x1, y1) * (wx1 * wy1)[:, None])
    return out


# --------------------------------------------------------------------------
# Module-level forward functions
# --------------------------------------------------------------------------
def oft_bev_features(features, calib, corners_radar, weight, bias, scale):
    """One OFT head.  Returns ortho features (B, Cout, P*Q) plus (P, Q).

    Note: the module's `scale` only rescales img_size for the projection (kept); the
    OFT linear itself is weight + bias only (as in nn.Linear)."""
    B = calib.shape[0]
    corners = jnp.broadcast_to(corners_radar, (B,) + corners_radar.shape[1:])
    img_corners = perspective(calib.reshape(-1, 1, 1, 1, 3, 4), corners)
    H, W = features.shape[2:]
    img_size = jnp.array([W, H], dtype=features.dtype) / scale
    norm_corners = jnp.clip(2.0 * img_corners / img_size - 1.0, -1.0, 1.0)
    bbox_corners = jnp.concatenate(
        [jnp.minimum(norm_corners[:, :-1, :-1, :-1], norm_corners[:, :-1, 1:, :-1]),
         jnp.maximum(norm_corners[:, 1:, 1:, 1:], norm_corners[:, 1:, :-1, 1:])],
        axis=-1)
    batch, Zh, P, Q, _ = bbox_corners.shape
    bbox_corners = bbox_corners.reshape(batch, Zh, P * Q, 4)
    area = ((bbox_corners[..., 2:] - bbox_corners[..., :2]).prod(axis=-1)
            * H * W * 0.25 + EPSILON)                                  # (B, Zh, PQ)
    inv = jnp.where(area > EPSILON, 1.0 / area, 0.0)                   # visible / area

    integral_img = jnp.cumsum(jnp.cumsum(features, axis=-1), axis=-2)
    # Four integral-image corners, each pre-scaled by visible/area (folded into the
    # bilinear gather weights -> fuses with the gather epilogue, no extra HBM pass).
    tl = grid_sample_zeros(integral_img, bbox_corners[..., 0:2], inv)
    br = grid_sample_zeros(integral_img, bbox_corners[..., 2:4], inv)
    tr = grid_sample_zeros(
        integral_img, jnp.stack([bbox_corners[..., 2], bbox_corners[..., 1]], axis=-1), inv)
    bl = grid_sample_zeros(
        integral_img, jnp.stack([bbox_corners[..., 0], bbox_corners[..., 3]], axis=-1), inv)

    C = tl.shape[1]
    K = C * Zh                               # matches PyTorch (C, Zh) flatten ordering
    M = P * Q
    ortho = oft_fused_linear_relu(
        tl.reshape(batch, K, M), br.reshape(batch, K, M),
        tr.reshape(batch, K, M), bl.reshape(batch, K, M),
        weight, bias)                                                   # (B, Cout, M)
    return ortho, P, Q


def oftnet_forward(params, img_feats, calib, corners_radar):
    scales = [1 / 4.0, 1 / 8.0, 1 / 16.0, 1 / 32.0, 1 / 64.0]
    names = ["oft04", "oft08", "oft16", "oft32", "oft64"]
    orthos = []
    P = Q = None
    for feats, s, name in zip(img_feats, scales, names):
        o, P, Q = oft_bev_features(feats, calib, corners_radar,
                                   params[name + "_w"], params[name + "_b"], s)
        orthos.append(o)                                                # (B, C, P*Q)

    B, C, M = orthos[0].shape
    # Shared attention block: the five tiny 1x1-conv matmuls batched into one launch.
    pooled = jnp.stack([o.mean(axis=-1) for o in orthos])               # (5, B, C)
    att_w = params["att_w"].reshape(C, C)
    att = row_linear_act(pooled.reshape(-1, C), att_w.T, params["att_b"],
                         act="sigmoid").reshape(len(orthos), B, C)
    scaled = [o * att[i][:, :, None] for i, o in enumerate(orthos)]

    # bevencoder runs in the ortho's native (B, P, Q, channels) orientation
    # (channels-last, Cout on lanes); the 3x3 weight taps are transposed to
    # compensate and only the small final output is transposed back to NCHW.
    conv_in = (jnp.concatenate(scaled, axis=1)                          # (B, 5C, P*Q)
               .reshape(B, 5 * C, P, Q)
               .transpose(0, 2, 3, 1))                                  # (B, P, Q, 5C)

    w1 = jnp.transpose(params["conv1_w"], (3, 2, 1, 0))                 # (3,3,Cin,Cout), taps swapped
    w2 = jnp.transpose(params["conv2_w"], (3, 2, 1, 0))
    x = conv3x3_bn_relu(conv_in, w1, params["bn1_gamma"], params["bn1_beta"],
                        params["bn1_mean"], params["bn1_var"], stride=2,
                        out_dtype=jnp.bfloat16)
    x = conv3x3_bn_relu(x, w2, params["bn2_gamma"], params["bn2_beta"],
                        params["bn2_mean"], params["bn2_var"], stride=1,
                        out_dtype=jnp.float32)
    return x.transpose(0, 3, 2, 1)           # (B, P1, Q1, C) -> (B, C, Q1, P1) NCHW


# --------------------------------------------------------------------------
# Deterministic parameter initialisation (synthetic; no checkpoint loading)
# --------------------------------------------------------------------------
def init_params(key, imc, height_channels):
    keys = jax.random.split(key, 20)

    def nrm(k, shape, scale=0.05):
        return scale * jax.random.normal(k, shape, jnp.float32)

    p = {}
    for i, name in enumerate(["oft04", "oft08", "oft16", "oft32", "oft64"]):
        p[name + "_w"] = nrm(keys[i], (imc, height_channels))
        p[name + "_b"] = nrm(keys[5 + i], (imc,))
    p["att_w"] = nrm(keys[10], (imc, imc, 1, 1))
    p["att_b"] = nrm(keys[11], (imc,))
    p["conv1_w"] = nrm(keys[12], (imc, imc * 5, 3, 3))
    p["conv2_w"] = nrm(keys[13], (imc, imc, 3, 3))
    p["bn1_gamma"] = 1.0 + nrm(keys[14], (imc,))
    p["bn1_beta"] = nrm(keys[15], (imc,))
    p["bn1_mean"] = nrm(keys[16], (imc,))
    p["bn1_var"] = 1.0 + jnp.abs(nrm(keys[17], (imc,)))
    p["bn2_gamma"] = 1.0 + nrm(keys[18], (imc,))
    p["bn2_beta"] = nrm(keys[19], (imc,))
    p["bn2_mean"] = jnp.zeros((imc,), jnp.float32)
    p["bn2_var"] = jnp.ones((imc,), jnp.float32)
    return p


# --------------------------------------------------------------------------
if __name__ == "__main__":
    key = jax.random.PRNGKey(0)
    B = 2
    imc = 8                                   # small stand-in for 256
    # Small BEV grid (exact binary fractions so arange counts are deterministic):
    grid_size = (2.0, 1.5)
    grid_offset = (0.0, -0.75, 0.0)
    grid_res = 0.25
    grid_z_min, grid_z_max = -0.5, 0.5
    height_channels = int((grid_z_max - grid_z_min) / grid_res * imc)     # 32

    corners_radar = make_grid(grid_size, grid_offset, grid_res, grid_z_min, grid_z_max)

    kf = jax.random.split(key, 8)
    img_feats = [
        jax.random.normal(kf[0], (B, imc, 16, 16), jnp.float32),   # 1/4  of a 64x64 image
        jax.random.normal(kf[1], (B, imc, 8, 8), jnp.float32),     # 1/8
        jax.random.normal(kf[2], (B, imc, 4, 4), jnp.float32),     # 1/16
        jax.random.normal(kf[3], (B, imc, 2, 2), jnp.float32),     # 1/32
        jax.random.normal(kf[4], (B, imc, 1, 1), jnp.float32),     # 1/64
    ]
    # Simple lidar->image projection (u,v,depth) with depth = x + 2 (always > 0).
    fx, fy, cx, cy, t = 80.0, 120.0, 32.0, 32.0, 2.0
    base_calib = jnp.array([[cx, -fx, 0.0, cx * t],
                            [cy, 0.0, -fy, cy * t],
                            [1.0, 0.0, 0.0, t]], jnp.float32)
    calib = base_calib[None] + 0.01 * jax.random.normal(kf[5], (B, 3, 4), jnp.float32)

    params = init_params(kf[6], imc, height_channels)

    out = oftnet_forward(params, img_feats, calib, corners_radar)
    out = jax.block_until_ready(out)

    assert out.shape == (B, imc, 3, 4), out.shape
    assert bool(jnp.all(jnp.isfinite(out)))
    print("KERNEL_OK")
</pallas_src>

<mosaic_0001>
module attributes {stable_mosaic.version = 11 : i64} {
  func.func @_oft_fused_kernel(%arg0: i32, %arg1: i32, %arg2: memref<1x32x48xf32, #tpu.memory_space<vmem>>, %arg3: memref<1x32x48xf32, #tpu.memory_space<vmem>>, %arg4: memref<1x32x48xf32, #tpu.memory_space<vmem>>, %arg5: memref<1x32x48xf32, #tpu.memory_space<vmem>>, %arg6: memref<8x32xbf16, #tpu.memory_space<vmem>>, %arg7: memref<8x1xf32, #tpu.memory_space<vmem>>, %arg8: memref<1x8x48xf32, #tpu.memory_space<vmem>>) attributes {dimension_semantics = [#tpu.dimension_semantics<parallel>, #tpu.dimension_semantics<parallel>], iteration_bounds = array<i64: 1, 2>, scalar_prefetch = 0 : i64, scratch_operands = 0 : i64, tpu.core_type = #tpu.core_type<tc>, window_params = [{transform_indices = @transform_0, window_bounds = array<i64: 1, 32, 48>}, {transform_indices = @transform_1, window_bounds = array<i64: 1, 32, 48>}, {transform_indices = @transform_2, window_bounds = array<i64: 1, 32, 48>}, {transform_indices = @transform_3, window_bounds = array<i64: 1, 32, 48>}, {pipeline_mode = #tpu.pipeline_mode<synchronous>, transform_indices = @transform_4, window_bounds = array<i64: 8, 32>}, {pipeline_mode = #tpu.pipeline_mode<synchronous>, transform_indices = @transform_5, window_bounds = array<i64: 8, 1>}, {transform_indices = @transform_6, window_bounds = array<i64: 1, 8, 48>}]} {
    %c0 = arith.constant 0 : index
    %c0_0 = arith.constant 0 : index
    %c0_1 = arith.constant 0 : index
    %0 = vector.load %arg2[%c0, %c0_0, %c0_1] : memref<1x32x48xf32, #tpu.memory_space<vmem>>, vector<1x32x48xf32>
    %1 = vector.shape_cast %0 : vector<1x32x48xf32> to vector<32x48xf32>
    %c0_2 = arith.constant 0 : index
    %c0_3 = arith.constant 0 : index
    %c0_4 = arith.constant 0 : index
    %2 = vector.load %arg3[%c0_2, %c0_3, %c0_4] : memref<1x32x48xf32, #tpu.memory_space<vmem>>, vector<1x32x48xf32>
    %3 = vector.shape_cast %2 : vector<1x32x48xf32> to vector<32x48xf32>
    %4 = arith.addf %1, %3 : vector<32x48xf32>
    %c0_5 = arith.constant 0 : index
    %c0_6 = arith.constant 0 : index
    %c0_7 = arith.constant 0 : index
    %5 = vector.load %arg4[%c0_5, %c0_6, %c0_7] : memref<1x32x48xf32, #tpu.memory_space<vmem>>, vector<1x32x48xf32>
    %6 = vector.shape_cast %5 : vector<1x32x48xf32> to vector<32x48xf32>
    %c0_8 = arith.constant 0 : index
    %c0_9 = arith.constant 0 : index
    %c0_10 = arith.constant 0 : index
    %7 = vector.load %arg5[%c0_8, %c0_9, %c0_10] : memref<1x32x48xf32, #tpu.memory_space<vmem>>, vector<1x32x48xf32>
    %8 = vector.shape_cast %7 : vector<1x32x48xf32> to vector<32x48xf32>
    %9 = arith.addf %6, %8 : vector<32x48xf32>
    %10 = arith.subf %4, %9 : vector<32x48xf32>
    %c0_11 = arith.constant 0 : index
    %c0_12 = arith.constant 0 : index
    %11 = vector.load %arg6[%c0_11, %c0_12] : memref<8x32xbf16, #tpu.memory_space<vmem>>, vector<8x32xbf16>
    %12 = arith.truncf %10 : vector<32x48xf32> to vector<32x48xbf16>
    %cst = arith.constant dense<0.000000e+00> : vector<8x48xf32>
    %13 = tpu.matmul %11, %12, %cst {dimension_numbers = #tpu.dot_dimension_numbers<[1], [0], [0], [1], [0, 0, 1, 1], [], []>} : vector<8x32xbf16>, vector<32x48xbf16>, vector<8x48xf32> -> vector<8x48xf32>
    %c0_13 = arith.constant 0 : index
    %c0_14 = arith.constant 0 : index
    %14 = vector.load %arg7[%c0_13, %c0_14] : memref<8x1xf32, #tpu.memory_space<vmem>>, vector<8x1xf32>
    %15 = vector.broadcast %14 : vector<8x1xf32> to vector<8x48xf32>
    %16 = arith.addf %13, %15 : vector<8x48xf32>
    %cst_15 = arith.constant 0.000000e+00 : f32
    %17 = vector.broadcast %cst_15 : f32 to vector<8x48xf32>
    %18 = arith.maximumf %16, %17 : vector<8x48xf32>
    %c0_16 = arith.constant 0 : index
    %c0_17 = arith.constant 0 : index
    %c0_18 = arith.constant 0 : index
    %19 = vector.load %arg8[%c0_16, %c0_17, %c0_18] : memref<1x8x48xf32, #tpu.memory_space<vmem>>, vector<1x8x48xf32>
    %20 = vector.shape_cast %19 : vector<1x8x48xf32> to vector<8x48xf32>
    %21 = vector.shape_cast %18 : vector<8x48xf32> to vector<1x8x48xf32>
    tpu.vector_store %arg8[%c0_16, %c0_17, %c0_18], %21 {strides = array<i32>} : memref<1x8x48xf32, #tpu.memory_space<vmem>>, vector<1x8x48xf32>,
    return
  }
  func.func @transform_0(%arg0: i32, %arg1: i32) -> (i32, i32, i32) {
    %c0_i32 = arith.constant 0 : i32
    %c0_i32_0 = arith.constant 0 : i32
    return %arg1, %c0_i32, %arg0 : i32, i32, i32
  }
  func.func @transform_1(%arg0: i32, %arg1: i32) -> (i32, i32, i32) {
    %c0_i32 = arith.constant 0 : i32
    %c0_i32_0 = arith.constant 0 : i32
    return %arg1, %c0_i32, %arg0 : i32, i32, i32
  }
  func.func @transform_2(%arg0: i32, %arg1: i32) -> (i32, i32, i32) {
    %c0_i32 = arith.constant 0 : i32
    %c0_i32_0 = arith.constant 0 : i32
    return %arg1, %c0_i32, %arg0 : i32, i32, i32
  }
  func.func @transform_3(%arg0: i32, %arg1: i32) -> (i32, i32, i32) {
    %c0_i32 = arith.constant 0 : i32
    %c0_i32_0 = arith.constant 0 : i32
    return %arg1, %c0_i32, %arg0 : i32, i32, i32
  }
  func.func @transform_4(%arg0: i32, %arg1: i32) -> (i32, i32) {
    %c0_i32 = arith.constant 0 : i32
    %c0_i32_0 = arith.constant 0 : i32
    %c0_i32_1 = arith.constant 0 : i32
    return %c0_i32, %c0_i32_0 : i32, i32
  }
  func.func @transform_5(%arg0: i32, %arg1: i32) -> (i32, i32) {
    %c0_i32 = arith.constant 0 : i32
    %c0_i32_0 = arith.constant 0 : i32
    %c0_i32_1 = arith.constant 0 : i32
    return %c0_i32, %c0_i32_0 : i32, i32
  }
  func.func @transform_6(%arg0: i32, %arg1: i32) -> (i32, i32, i32) {
    %c0_i32 = arith.constant 0 : i32
    %c0_i32_0 = arith.constant 0 : i32
    return %arg1, %c0_i32, %arg0 : i32, i32, i32
  }
}

</mosaic_0001>

<bundles_post_ra>
// kernel: tpu_custom_call.1
= control target key start
LH: loop header
LB: loop body
LE: loop exit
PB: predicated region body
PF: predicated region fallthrough
CT: control target
= control target key end

     0   :  { %s1383_s0 = inlined_call_operand.hbm [shape: f32[2,32,48], index: 0, kind: input, shape index: {}]   ;;  %s1384_s1 = inlined_call_operand.hbm [shape: f32[2,32,48], index: 1, kind: input, shape index: {}]   ;;  %s1385_s2 = inlined_call_operand.hbm [shape: f32[2,32,48], index: 2, kind: input, shape index: {}]   ;;  %s1386_s3 = inlined_call_operand.hbm [shape: f32[2,32,48], index: 3, kind: input, shape index: {}]   ;;  %s1387_s4 = inlined_call_operand.vmem [shape: bf16[8,32], index: 4, kind: input, shape index: {}]   ;;  %s1388_s5 = inlined_call_operand.vmem [shape: f32[8,1], index: 5, kind: input, shape index: {}]   ;;  %s1389_s6 = inlined_call_operand.hbm [shape: f32[2,8,48], index: 6, kind: output, shape index: {}]  }
   0x1   :  { %1403 = sst [smem:[#allocation22_spill]] %s1383_s0 }
   0x2   :  { %1404 = sst [smem:[#allocation23_spill]] %s1384_s1 }
   0x3   :  { %11 = vsyncpa [#allocation3], 0 }
   0x4   :  { %13 = vsyncpa [#allocation3 + $0x1], 0 }
   0x5   :  { %14 = vsyncpa [#allocation6], 0 }
   0x6   :  { %16 = vsyncpa [#allocation6 + $0x1], 0 }
   0x7   :  { %17 = vsyncpa [#allocation9], 0 }
   0x8   :  { %19 = vsyncpa [#allocation9 + $0x1], 0 }
   0x9   :  { %20 = vsyncpa [#allocation4], 0 }
   0xa   :  { %22 = vsyncpa [#allocation4 + $0x1], 0  ;;  %s1048_s21 = smov 0   ;;  %s1050_s22 = smov 0  }
   0xb   :  { %s1052_s23 = smov 0   ;;  %s1054_s24 = smov 0  }
   0xc   :  { %s1056_s25 = smov 0   ;;  %s1058_s26 = smov 0  }
   0xd LB: > { %1405 = sst [smem:[#allocation15_spill]] %s981_s21  ;;  %s1079_s27 = sadd.s32 4294967295, %s1001_s26   ;;  %s1001_s26 = sphi %s1058_s26, %s28_s26   ;;  %s997_s25 = sphi %s1056_s25, %s1436_s25   ;;  %s993_s24 = sphi %s1054_s24, %s1435_s24   ;;  %s989_s23 = sphi %s1052_s23, %s1434_s23   ;;  %s985_s22 = sphi %s1050_s22, %s1438_s22   ;;  %s981_s21 = sphi %s1048_s21, %s1437_s21  }
   0xe   : > { %1406 = sst [smem:[#allocation16_spill]] %s989_s23  ;;  %s667_s28 = sadd.s32 4294967294, %s1001_s26  }
   0xf   : > { %1407 = sst [smem:[#allocation17_spill]] %s997_s25  ;;  %s37_s29 = sadd.s32 1, %s997_s25 }
  0x10   : > { %1408 = sst [smem:[#allocation18_spill]] %s1001_s26  ;;  %s49_s30 = sadd.s32 1, %s989_s23 }
  0x11   : > { %p38_p0 = scmp.ge.s32.totalorder %s37_s29, 2  ;;  %p56_p1 = scmp.ne.s32.totalorder %s989_s23, %s985_s22 }
  0x12   : > { %p57_p2 = scmp.eq.s32.totalorder %s1001_s26, 0  ;;  %p62_p3 = scmp.ne.s32.totalorder %s985_s22, %s981_s21 }
  0x13   : > { %s1440_s29 = smov (%p38_p0, %s37_s29), 0  ;;  %p63_p5 = scmp.eq.s32.totalorder %s1079_s27, 0 }
  0x14   : > { %1409 = sst [smem:[#allocation19_spill]] %s1440_s29  ;;  %p1091_p4 = por %p57_p2, %p56_p1 }
  0x15   : > { %s44_s8 = ssub.s32 %s997_s25, %s1440_s29  ;;  %p214_p6 = scmp.eq.s32.totalorder %s1079_s27, 1 }
  0x16   : > { %p47_p7 = scmp.eq.s32.totalorder %s44_s8, 0  ;;  %p1099_p8 = por %p63_p5, %p62_p3 }
  0x17   : > { %p1103_p9 = por %p214_p6, %p56_p1  ;;  %p220_p10 = scmp.eq.s32.totalorder %s667_s28, 1 }
  0x18   : > { %s1411_s9 = scalar_select %p1099_p8, 1, 0 }
  0x19   : > { %s1412_s10 = scalar_select %p1103_p9, 1, 0 }
  0x1a   : > { %s1108_s11 = scalar_select %p47_p7, %s989_s23, %s49_s30  }
  0x1b   : > { %p1110_p11 = por %p220_p10, %p62_p3  ;;  %p735_p13 = scmp.lt.s32.totalorder %s1001_s26, 2 }
  0x1c   : > { %1413 = sst [smem:[#allocation20_spill]] %s1108_s11  ;;  %s1117_s13 = sand.u32 1, %s989_s23  }
  0x1d   : > { %s1414_s12 = scalar_select %p1110_p11, 1, 0 }
  0x1e   : > { %s1120_s14 = sshll.u32 %s1117_s13, 5  ;;  %s1123_s15 = sshll.u32 %s997_s25, 9 }
  0x1f   : > { %1415 = sst [smem:[#allocation21_spill]] %s1414_s12  ;;  %p1127_p0 = pnand %p735_p13, %p1091_p4 }
  0x20   : > { %s268_s17 = sand.u32 1, %s1001_s26   ;;  %s1417_s1 = sld [smem:[#allocation23_spill]] }
  0x21   : > { %s272_s28 = scalar_lea.vmem [#allocation5], %s1120_s14  ;;  %s1143_s7 = scalar_lea.sflag [#allocation6], %s268_s17 }
  0x22   : > { %s280_s30 = sshll.u32 %s272_s28, 4  ;;  %p1149_p4 = pneg %p1127_p0  ;;  %s1140_s30 = int_to_ptr.vmem [resolvable:$true] %s280_s30 }
  0x26   : > { %s1136_s20 = scalar_lea.hbm %s1417_s1, %s1123_s15  ;;  %s796_s28 = scalar_lea.hbm %s1417_s1, 1024 }
  0x27   : > { %s791_s8 = scalar_lea.hbm %s1136_s20, 512  ;;  %p797_p7 = scmp.lt.u32.totalorder %s1136_s20, %s1417_s1 }
  0x28   : > { %p792_p3 = scmp.ne.s32.totalorder %s1136_s20, %s791_s8  ;;  %p798_p10 = scmp.lt.u32.totalorder %s796_s28, %s791_s8 }
  0x29   : > { %p800_p12 = scmp.lt.u32.totalorder %s791_s8, %s1136_s20 }
  0x2a   : > { %p794_p5 = pnand %p1149_p4, %p792_p3  ;;  %p799_p13 = por %p798_p10, %p797_p7 }
  0x2c   : > { %p795_p6 = pneg %p794_p5  ;;  %p801_p1 = por %p800_p12, %p799_p13 }
  0x2e   : > { %p802_p2 = pnand %p801_p1, %p795_p6 }
  0x30   : > { %805 = shalt.err (!%p802_p2)
}
  0x31   : > { %s806_s17 = scalar_lea.vmem %s1140_s30, 512  ;;  %s1003_s18 = smov [#allocation5]  }
  0x32   : > { %p807_p3 = scmp.ne.s32.totalorder %s1140_s30, %s806_s17  ;;  %s811_s19 = sshll.u32 %s1003_s18, 4  ;;  %s812_s19 = int_to_ptr.vmem [resolvable:$false] %s811_s19 }
  0x33   : > { %s813_s25 = scalar_lea.vmem %s812_s19, 1024  ;;  %p814_p9 = scmp.lt.s32.totalorder %s1140_s30, %s812_s19 }
  0x34   : > { %p809_p5 = pnand %p807_p3, %p1149_p4  ;;  %p815_p8 = scmp.lt.s32.totalorder %s813_s25, %s806_s17 }
  0x36   : > { %p810_p11 = pneg %p809_p5  ;;  %p816_p7 = por %p815_p8, %p814_p9 }
  0x38   : > { %p817_p10 = pnand %p816_p7, %p810_p11 }
  0x3a   : > { %820 = shalt.err (!%p817_p10)
}
  0x3b   : > { %s1394_s11 = smov 128   ;;  %s1396_s8 = smov 8  }
  0x3c   : > { %724 = dma.hbm_to_vmem [thread:$0]  (!%p1127_p0), %s1136_s20, 512, %s1140_s30, %s1143_s7, %s1394_s11, %s1394_s11, %s1396_s8  }
  0x3d   : > { %p1419_p8 = scmp.lt.s32.totalorder %s1001_s26, 3  ;;  %p1420_p9 = scmp.ge.s32.totalorder %s1001_s26, 1 }
  0x3e   : > { %s1422_s0 = sld [smem:[#allocation22_spill]]  ;;  %s250_s25 = scalar_lea.vmem [#allocation2], %s1120_s14 }
  0x3f   : > { %p1180_p11 = pnand %p1420_p9, %p1419_p8  ;;  %s258_s1 = sshll.u32 %s250_s25, 4  ;;  %s1191_s1 = int_to_ptr.vmem [resolvable:$true] %s258_s1 }
  0x40   : > { %s1197_s11 = scalar_lea.hbm %s1385_s2, %s1123_s15  ;;  %s247_s8 = scalar_lea.sflag [#allocation3], %s1117_s13 }
  0x41   : > { %s1421_s28 = scalar_select %p1180_p11, 1, 0 }
  0x44   : > { %s1188_s19 = scalar_lea.hbm %s1422_s0, %s1123_s15  ;;  %s826_s26 = scalar_lea.hbm %s1422_s0, 1024 }
  0x45   : > { %s821_s23 = scalar_lea.hbm %s1188_s19, 512  ;;  %p827_p6 = scmp.lt.u32.totalorder %s1188_s19, %s1422_s0 }
  0x46   : > { %p822_p12 = scmp.ne.s32.totalorder %s1188_s19, %s821_s23  ;;  %p828_p13 = scmp.lt.u32.totalorder %s826_s26, %s821_s23 }
  0x47   : > { %p830_p5 = scmp.lt.u32.totalorder %s821_s23, %s1188_s19 }
  0x48   : > { %p824_p1 = pnand %p822_p12, %p1149_p4  ;;  %p829_p3 = por %p828_p13, %p827_p6 }
  0x4a   : > { %p825_p2 = pneg %p824_p1  ;;  %p831_p7 = por %p830_p5, %p829_p3 }
  0x4c   : > { %p832_p10 = pnand %p831_p7, %p825_p2 }
  0x4e   : > { %835 = shalt.err (!%p832_p10)
}
  0x4f   : > { %s836_s25 = scalar_lea.vmem %s1191_s1, 512  ;;  %s1006_s20 = smov [#allocation2]  }
  0x50   : > { %p837_p8 = scmp.ne.s32.totalorder %s1191_s1, %s836_s25  ;;  %s841_s30 = sshll.u32 %s1006_s20, 4  ;;  %s842_s30 = int_to_ptr.vmem [resolvable:$false] %s841_s30 }
  0x51   : > { %s843_s21 = scalar_lea.vmem %s842_s30, 1024  ;;  %p844_p1 = scmp.lt.s32.totalorder %s1191_s1, %s842_s30 }
  0x52   : > { %p839_p9 = pnand %p837_p8, %p1149_p4  ;;  %p845_p11 = scmp.lt.s32.totalorder %s843_s21, %s836_s25 }
  0x54   : > { %p840_p12 = pneg %p839_p9  ;;  %p846_p6 = por %p845_p11, %p844_p1 }
  0x56   : > { %p847_p13 = pnand %p846_p6, %p840_p12 }
  0x58   : > { %850 = shalt.err (!%p847_p13)
}
  0x59   : > { %s1423_s23 = smov 8   ;;  %s1424_s26 = smov 128  }
  0x5a   : > { %721 = dma.hbm_to_vmem [thread:$0]  (!%p1127_p0), %s1188_s19, 512, %s1191_s1, %s247_s8, %s1424_s26, %s1424_s26, %s1423_s23  }
  0x5b   : > { %s294_s12 = scalar_lea.vmem [#allocation7], %s1120_s14  ;;  %s851_s18 = scalar_lea.hbm %s1197_s11, 512 }
  0x5c   : > { %s302_s17 = sshll.u32 %s294_s12, 4  ;;  %p852_p11 = scmp.ne.s32.totalorder %s1197_s11, %s851_s18  ;;  %s1227_s17 = int_to_ptr.vmem [resolvable:$true] %s302_s17 }
  0x5d   : > { %s856_s30 = scalar_lea.hbm %s1385_s2, 1024  ;;  %p857_p5 = scmp.lt.u32.totalorder %s1197_s11, %s1385_s2 }
  0x5e   : > { %p854_p2 = pnand %p852_p11, %p1149_p4  ;;  %p858_p7 = scmp.lt.u32.totalorder %s856_s30, %s851_s18 }
  0x5f   : > { %p860_p8 = scmp.lt.u32.totalorder %s851_s18, %s1197_s11 }
  0x60   : > { %p855_p3 = pneg %p854_p2  ;;  %p859_p10 = por %p858_p7, %p857_p5 }
  0x62   : > { %p861_p9 = por %p860_p8, %p859_p10 }
  0x64   : > { %p862_p12 = pnand %p861_p9, %p855_p3 }
  0x66   : > { %865 = shalt.err (!%p862_p12)
}
  0x67   : > { %s866_s1 = scalar_lea.vmem %s1227_s17, 512  ;;  %s1007_s8 = smov [#allocation7]  }
  0x68   : > { %p867_p1 = scmp.ne.s32.totalorder %s1227_s17, %s866_s1  ;;  %s871_s19 = sshll.u32 %s1007_s8, 4  ;;  %s872_s19 = int_to_ptr.vmem [resolvable:$false] %s871_s19 }
  0x69   : > { %s873_s0 = scalar_lea.vmem %s872_s19, 1024  ;;  %p874_p11 = scmp.lt.s32.totalorder %s1227_s17, %s872_s19 }
  0x6a   : > { %p869_p6 = pnand %p867_p1, %p1149_p4  ;;  %p875_p2 = scmp.lt.s32.totalorder %s873_s0, %s866_s1 }
  0x6c   : > { %p870_p13 = pneg %p869_p6  ;;  %p876_p5 = por %p875_p2, %p874_p11 }
  0x6e   : > { %p877_p7 = pnand %p876_p5, %p870_p13 }
  0x70   : > { %880 = shalt.err (!%p877_p7)
}
  0x71   : > { %727 = dma.hbm_to_vmem [thread:$0]  (!%p1127_p0), %s1197_s11, 512, %s1227_s17, %s1143_s7, %s1424_s26, %s1424_s26, %s1423_s23  }
  0x72   : > { %s1258_s25 = scalar_lea.hbm %s1386_s3, %s1123_s15  ;;  %s316_s20 = scalar_lea.vmem [#allocation8], %s1120_s14 }
  0x73   : > { %s324_s30 = sshll.u32 %s316_s20, 4  ;;  %s313_s21 = scalar_lea.sflag [#allocation9], %s1117_s13  ;;  %s1261_s30 = int_to_ptr.vmem [resolvable:$true] %s324_s30 }
  0x74   : > { %s881_s1 = scalar_lea.hbm %s1258_s25, 512  ;;  %s886_s17 = scalar_lea.hbm %s1386_s3, 1024 }
  0x75   : > { %p882_p3 = scmp.ne.s32.totalorder %s1258_s25, %s881_s1  ;;  %p887_p9 = scmp.lt.u32.totalorder %s1258_s25, %s1386_s3 }
  0x76   : > { %p888_p12 = scmp.lt.u32.totalorder %s886_s17, %s881_s1  ;;  %p890_p6 = scmp.lt.u32.totalorder %s881_s1, %s1258_s25 }
  0x77   : > { %p884_p10 = pnand %p882_p3, %p1149_p4 }
  0x78   : > { %p889_p1 = por %p888_p12, %p887_p9 }
  0x79   : > { %p885_p8 = pneg %p884_p10 }
  0x7a   : > { %p891_p13 = por %p890_p6, %p889_p1 }
  0x7c   : > { %p892_p11 = pnand %p891_p13, %p885_p8 }
  0x7e   : > { %895 = shalt.err (!%p892_p11)
}
  0x7f   : > { %s896_s14 = scalar_lea.vmem %s1261_s30, 512  ;;  %s1008_s19 = smov [#allocation8]  }
  0x80   : > { %p897_p2 = scmp.ne.s32.totalorder %s1261_s30, %s896_s14  ;;  %s901_s0 = sshll.u32 %s1008_s19, 4  ;;  %s902_s0 = int_to_ptr.vmem [resolvable:$false] %s901_s0 }
  0x81   : > { %s903_s12 = scalar_lea.vmem %s902_s0, 1024  ;;  %p904_p3 = scmp.lt.s32.totalorder %s1261_s30, %s902_s0 }
  0x82   : > { %p899_p5 = pnand %p897_p2, %p1149_p4  ;;  %p905_p10 = scmp.lt.s32.totalorder %s903_s12, %s896_s14 }
  0x84   : > { %p900_p7 = pneg %p899_p5  ;;  %p906_p9 = por %p905_p10, %p904_p3 }
  0x86   : > { %p907_p12 = pnand %p906_p9, %p900_p7 }
  0x88   : > { %910 = shalt.err (!%p907_p12)
}
  0x89   : > { %730 = dma.hbm_to_vmem [thread:$0]  (!%p1127_p0), %s1258_s25, 512, %s1261_s30, %s313_s21, %s1424_s26, %s1424_s26, %s1423_s23  }
  0x8a   : > { %p1425_p4 = scmp.ne.s32.totalorder %s1421_s28, 0 }
  0x8b   : > { %s1293_s29 = sand.u32 (!%p1425_p4), 1, %s985_s22   ;;  %p1426_p8 = scmp.ne.s32.totalorder (!%p1425_p4), %s1411_s9, 0 }
  0x8c   : > { %336 = sbr.rel (%p1425_p4) target bundleno = 401 (0x191), region = 44  ;;  %s683_s18 = sshll.u32 (!%p1425_p4), %s1293_s29, 5 }
  0x8d   : > { %s339_s20 = scalar_lea.sflag (!%p1425_p4), [#allocation3], %s1293_s29  ;;  %s1297_s16 = scalar_lea.vmem (!%p1425_p4), [#allocation2], %s683_s18 }
  0x93   : > { %964 = dma.done.wait (%p1426_p8), %s339_s20, 512  }
  0x94   : > { %966 = vsyncadd (%p1426_p8), %s339_s20, 4294966784  ;;  %s347_s13 = sand.u32 1, %s1079_s27   ;;  %s351_s23 = scalar_lea.vmem [#allocation5], %s683_s18 }
  0x95   : > { %s348_s28 = scalar_lea.sflag [#allocation6], %s347_s13 }
  0x96   : > { %968 = dma.done.wait (%p1426_p8), %s348_s28, 1024  }
  0x97   : > { %970 = vsyncadd (%p1426_p8), %s348_s28, 4294966272  ;;  %s360_s26 = scalar_lea.vmem [#allocation7], %s683_s18  ;;  %s366_s25 = scalar_lea.sflag [#allocation9], %s1293_s29 }
  0x98   : > { %s1309_s30 = scalar_lea.vmem [#allocation8], %s683_s18 }
  0x99   : > { %972 = dma.done.wait (%p1426_p8), %s366_s25, 512  }
  0x9a   : > { %974 = vsyncadd (%p1426_p8), %s366_s25, 4294966784  ;;  %v1009_v0 = vmov 0.0   ;;  %vm1010_vm0 = vmmov 0   ;;  %v1011_v1 = vmov 0   ;;  %v414_v2 = vld [vmem:[%s1297_s16] sm:$0xff]  ;;  %v415_v3 = vld [vmem:[%s1297_s16 + $0x8] sm:$0xff] }
  0x9b   : > { %700 = vmatprep.subr.bf16.mxu0 %v1009_v0  ;;  %704 = vmatprep.mubr.msk.bf16.mxu0 %vm1010_vm0, %v1009_v0  ;;  %v418_v4 = vld [vmem:[%s351_s23] sm:$0xff]  ;;  %v419_v5 = vld [vmem:[%s351_s23 + $0x8] sm:$0xff]  ;;  %v416_v12 = vld [vmem:[%s1297_s16 + $0x10] sm:$0xff]  ;;  %vm451_vm1 = vcmask 261120   ;;  %s687_s7 = sshll.u32 %s1293_s29, 3  ;;  %s690_s11 = sshll.u32 %s993_s24, 7 }
  0x9c   : > { %790 = vset.pattern.permute.xlu0 %v1011_v1  ;;  %v422_v6 = vadd.f32 %v418_v4, %v414_v2  ;;  %v426_v7 = vld [vmem:[%s360_s26] sm:$0xff]  ;;  %v427_v8 = vld [vmem:[%s360_s26 + $0x8] sm:$0xff]  ;;  %v423_v9 = vadd.f32 %v419_v5, %v415_v3  ;;  %v417_v15 = vld [vmem:[%s1297_s16 + $0x18] sm:$0xff]  ;;  %s412_s17 = scalar_lea.vmem [#allocation10], %s687_s7  ;;  %vm496_vm2 = vcmask 392192   ;;  %s1334_s19 = scalar_lea.hbm %s1389_s6, %s690_s11 }
  0x9d   : > { %v430_v10 = vld [vmem:[%s1309_s30] sm:$0xff]  ;;  %v431_v11 = vld [vmem:[%s1309_s30 + $0x8] sm:$0xff]  ;;  %v420_v16 = vld [vmem:[%s351_s23 + $0x10] sm:$0xff]  ;;  %s513_s15 = sshll.u32 %s412_s17, 4  ;;  %s499_s24 = scalar_lea.sflag [#allocation4], %s1293_s29  ;;  %s1336_s15 = int_to_ptr.vmem [resolvable:$true] %s513_s15 }
  0x9e   : > { %v434_v13 = vadd.f32 %v430_v10, %v426_v7  ;;  %v435_v14 = vadd.f32 %v431_v11, %v427_v8  ;;  %v421_v17 = vld [vmem:[%s351_s23 + $0x18] sm:$0xff]  ;;  %v424_v18 = vadd.f32 %v420_v16, %v416_v12  ;;  %v428_v20 = vld [vmem:[%s360_s26 + $0x10] sm:$0xff]  ;;  %v445_v27 = vld [vmem:[%s1388_s5] sm:$0xff]  ;;  %s911_s0 = scalar_lea.vmem %s1336_s15, 128  ;;  %p1427_p1 = scmp.ne.s32.totalorder %s1412_s10, 0 }
  0x9f   : > { %v425_v19 = vadd.f32 %v421_v17, %v417_v15  ;;  %v429_v21 = vld [vmem:[%s360_s26 + $0x18] sm:$0xff]  ;;  %v432_v22 = vld [vmem:[%s1309_s30 + $0x10] sm:$0xff]  ;;  %448 = vperm.xlu0 %790, %v445_v27   ;;  %v442_v33 = vld [vmem:[%s1387_s4] sm:$0xf]  ;;  %p912_p0 = scmp.ne.s32.totalorder %s1336_s15, %s911_s0  ;;  %s1012_s12 = smov [#allocation10]  }
  0xa0   : > { %v438_v23 = vsub.f32 %v422_v6, %v434_v13  ;;  %v439_v24 = vsub.f32 %v423_v9, %v435_v14  ;;  %v433_v25 = vld [vmem:[%s1309_s30 + $0x18] sm:$0xff]  ;;  %v436_v26 = vadd.f32 %v432_v22, %v428_v20  ;;  %s915_s18 = sshll.u32 %s1012_s12, 4  ;;  %s916_s18 = int_to_ptr.vmem [resolvable:$false] %s915_s18 }
  0xa1   : > { %v437_v28 = vadd.f32 %v433_v25, %v429_v21  ;;  %p913_p6 = pnand %p912_p0, %p1427_p1  ;;  %s917_s20 = scalar_lea.vmem %s916_s18, 256 }
  0xa2   : > { %v443_v29 = vpack.c.bf16 %v439_v24, %v438_v23  ;;  %v440_v30 = vsub.f32 %v424_v18, %v436_v26  ;;  %p918_p11 = scmp.lt.s32.totalorder %s1336_s15, %s916_s18  ;;  %p919_p2 = scmp.lt.s32.totalorder %s917_s20, %s911_s0 }
  0xa3   : > { %v441_v31 = vsub.f32 %v425_v19, %v437_v28  ;;  %p914_p13 = pneg %p913_p6 }
  0xa4   : > { %701 = vmatpush3.bf16.msra.mxu0 %v443_v29  ;;  %p920_p5 = por %p919_p2, %p918_p11 }
  0xa5   : > { %702 = vmatprep.subr.bf16.mxu0 %v1009_v0  ;;  %v444_v32 = vpack.c.bf16 %v441_v31, %v440_v30 }
  0xa6   : > { %p921_p7 = pnand %p920_p5, %p914_p13 }
  0xa8   : > { %703 = vmatpush3.bf16.msra.mxu0 %v444_v32 }
  0xab   : > { %705 = vmatmul.mubr.msk.bf16.vlgmr.msra.gmra.mrb[0].mxu0 %vm451_vm1, %v442_v33 }
 0x11e   : > { %v449_v34 = vpop.permute.xlu0 %448 }
 0x17e   : > { %v489_v35 = vpop.f32.mrb[0].mxu0 }
 0x17f   : > { %v490_v36 = vadd.f32 %v489_v35, %v449_v34  ;;  %v706_v37 = vpop.f32.mrb[1].mxu0 }
 0x180   : > { %v492_v38 = vpop.f32.mrb[2].mxu0 }
 0x181   : > { %v495_v39 = vmax.f32 %v490_v36, 0.0  ;;  %v707_v40 = vpop.f32.mrb[3].mxu0 }
 0x183   : > { %497 = vst.msk [vmem:[%s412_s17] sm:$0xff] %vm496_vm2, %v495_v39 }
 0x184   : > { %924 = shalt.err (!%p921_p7)
}
 0x185   : > { %s925_s29 = scalar_lea.hbm %s1334_s19, 128  ;;  %s929_s28 = scalar_lea.hbm %s1389_s6, 256 }
 0x186   : > { %p926_p3 = scmp.ne.s32.totalorder %s1334_s19, %s925_s29  ;;  %p930_p12 = scmp.lt.u32.totalorder %s1334_s19, %s1389_s6 }
 0x187   : > { %p931_p4 = scmp.lt.u32.totalorder %s929_s28, %s925_s29  ;;  %p933_p0 = scmp.lt.u32.totalorder %s925_s29, %s1334_s19 }
 0x188   : > { %p927_p10 = pnand %p926_p3, %p1427_p1 }
 0x189   : > { %p932_p8 = por %p931_p4, %p930_p12 }
 0x18a   : > { %p928_p9 = pneg %p927_p10 }
 0x18b   : > { %p934_p6 = por %p933_p0, %p932_p8 }
 0x18d   : > { %p935_p13 = pnand %p934_p6, %p928_p9 }
 0x18f   : > { %938 = shalt.err (!%p935_p13)
}
 0x190   : > { %716 = dma.vmem_to_hbm [thread:$0]  (%p1427_p1), %s1336_s15, 128, %s1334_s19, %s499_s24  }
 0x191 PF: > { %s1428_s25 = sld [smem:[#allocation15_spill]]  ;;  %s1429_s30 = sld [smem:[#allocation21_spill]] }
 0x192   : > { %s1430_s27 = sld [smem:[#allocation18_spill]] }
 0x197   : > { %s525_s9 = sand.u32 1, %s1428_s25   ;;  %p1431_p11 = scmp.ne.s32.totalorder %s1429_s30, 0 }
 0x198   : > { %p1432_p2 = scmp.ge.s32.totalorder %s1430_s27, 2  ;;  %s526_s21 = scalar_lea.sflag [#allocation4], %s525_s9 }
 0x19a   : > { %p732_p5 = pnand %p1432_p2, %p1431_p11 }
 0x19c   : > { %976 = dma.done.wait (!%p732_p5), %s526_s21, 128  }
 0x19d   : > { %978 = vsyncadd (!%p732_p5), %s526_s21, 4294967168  ;;  %s28_s26 = sadd.s32 1, %s1430_s27   ;;  %s1433_s1 = sld [smem:[#allocation16_spill]] }
 0x19e   : > { %p25_p7 = scmp.ge.s32.totalorder %s28_s26, 4   ;;  %s1434_s23 = sld [smem:[#allocation20_spill]] }
 0x19f   : > { %s1435_s24 = sld [smem:[#allocation17_spill]]  ;;  %s1436_s25 = sld [smem:[#allocation19_spill]] }
 0x1a0   : > { %s1437_s21 = smov %s985_s22  ;;  %27 = sbr.rel (!%p25_p7) target bundleno = 13 (0xd), region = 126 }
 0x1a3   : > { %s1438_s22 = smov %s1433_s1 }
 0x1a7   :  { %531 = vsyncpa [#allocation3], 1 }
 0x1a8   :  { %533 = vsyncpa [#allocation3 + $0x1], 1 }
 0x1a9   :  { %534 = vsyncpa [#allocation6], 1 }
 0x1aa   :  { %536 = vsyncpa [#allocation6 + $0x1], 1 }
 0x1ab   :  { %537 = vsyncpa [#allocation9], 1 }
 0x1ac   :  { %539 = vsyncpa [#allocation9 + $0x1], 1 }
 0x1ad   :  { %540 = vsyncpa [#allocation4], 1 }
 0x1ae   :  { %542 = vsyncpa [#allocation4 + $0x1], 1 }

</bundles_post_ra>
